<compile_context>
chip_gen: v7x
topology: tpu7x:2x2x1
jax: 0.10.0
libtpu: 0.0.40
codegen_flags: <defaults>
</compile_context>

<pallas_src>
import jax
import jax.numpy as jnp
from jax.experimental import pallas as pl
from jax.experimental.pallas import tpu as pltpu


# ----------------------------- configuration --------------------------------
GSIZE = 5            # obj.g dimension
KSIZE = 6            # obj.k dimension
HIDDEN = 32          # PhysObjEncoder hidden width

IN_DIM = GSIZE + KSIZE + 1   # 12  (= lanes of [g | k | t])
IN_PAD = 16                  # layer-1 contraction dim, padded to a sublane multiple
H2 = 2 * HIDDEN              # 64  (= cat([genc, kenc]))
LANE = 128                   # slab lane width

# parameter slab layout (rows of an (SLAB_ROWS, 128) f32 array):
#   [ 0, 16) : W1  block-diagonal fused g_enc/k_enc weight
#              rows 0..GSIZE-1,       cols 0..HIDDEN-1  = Wg
#              rows GSIZE..IN_DIM-1,  cols HIDDEN..H2-1 = Wk   (rest zero)
#   [16, 80) : W2  hidden-layer weight, rows 0..H2-1, cols 0..HIDDEN-1 (rest zero)
#   [80, 81) : b1  = [bg | bk | 0...]
#   [81, 82) : b2  = [bh | 0...]
#   [82, 88) : zero padding so the row count is a multiple of 8
W1_OFF, W2_OFF, B1_OFF, B2_OFF, SLAB_ROWS = 0, 16, 80, 81, 88


# ------------------------------ Pallas kernel --------------------------------
def _encoder_kernel(x_ref, p_ref, o_ref):
    f32 = jnp.float32
    x = x_ref[...]                                   # (TB, 16)
    w1 = p_ref[W1_OFF:W1_OFF + IN_PAD, 0:H2]         # (16, 64) block-diag [Wg | Wk]
    b1 = p_ref[B1_OFF:B1_OFF + 1, 0:H2]              # (1, 64)
    w2 = p_ref[W2_OFF:W2_OFF + H2, 0:HIDDEN]         # (64, 32)
    b2 = p_ref[B2_OFF:B2_OFF + 1, 0:HIDDEN]          # (1, 32)

    # fused g_enc / k_enc: cols [0,32) = relu(g@Wg+bg), cols [32,64) = relu(kt@Wk+bk)
    h = jnp.maximum(jnp.dot(x, w1, preferred_element_type=f32) + b1, 0.0)   # (TB, 64)

    # hidden(cat([genc, kenc])) -> (TB, 32), stored straight into the 32-lane output
    o_ref[...] = (jnp.dot(h, w2, preferred_element_type=f32) + b2).astype(o_ref.dtype)


# -------------------------------- wrapper ------------------------------------
def pack_params(p):
    """Pack PhysObjEncoder weights/biases into one (SLAB_ROWS, 128) f32 slab."""
    slab = jnp.zeros((SLAB_ROWS, LANE), jnp.float32)
    slab = slab.at[0:GSIZE, 0:HIDDEN].set(p["wg"])
    slab = slab.at[GSIZE:IN_DIM, HIDDEN:H2].set(p["wk"])
    slab = slab.at[W2_OFF:W2_OFF + H2, 0:HIDDEN].set(p["wh"])
    slab = slab.at[B1_OFF, 0:HIDDEN].set(p["bg"])
    slab = slab.at[B1_OFF, HIDDEN:H2].set(p["bk"])
    slab = slab.at[B2_OFF, 0:HIDDEN].set(p["bh"])
    return slab


def _choose_tile(batch, block_rows, min_grid_steps):
    """Pick a sublane-multiple row tile and the padded batch size."""
    tb = max(8, (int(block_rows) // 8) * 8)           # always a multiple of 8
    bp8 = ((batch + 7) // 8) * 8
    tb = min(tb, bp8)
    # keep >= min_grid_steps grid steps when the batch allows it (v7x megacore + pipelining)
    if bp8 // tb < min_grid_steps and bp8 >= 8 * min_grid_steps:
        tb = max(8, ((bp8 // min_grid_steps) // 8) * 8)
    bp = pl.cdiv(batch, tb) * tb
    return tb, bp


def phys_obj_encoder_forward(g, k, t, slab, *, block_rows=2048, min_grid_steps=2):
    """Batched PhysObjEncoder forward.

    g: (B, GSIZE), k: (B, KSIZE), t: (B, 1)  ->  (B, HIDDEN) float32
    """
    B = g.shape[0]
    tb, bp = _choose_tile(B, block_rows, min_grid_steps)

    # fused input prep: one zero-padded (bp, IN_PAD) activation buffer
    x = jnp.zeros((bp, IN_PAD), jnp.float32)
    x = x.at[:B, 0:GSIZE].set(g.astype(jnp.float32))
    x = x.at[:B, GSIZE:GSIZE + KSIZE].set(k.astype(jnp.float32))
    x = x.at[:B, GSIZE + KSIZE:IN_DIM].set(t.astype(jnp.float32))

    out = pl.pallas_call(
        _encoder_kernel,
        out_shape=jax.ShapeDtypeStruct((bp, HIDDEN), jnp.float32),
        grid=(bp // tb,),
        in_specs=[
            pl.BlockSpec((tb, IN_PAD), lambda i: (i, 0)),          # activation tile
            pl.BlockSpec((SLAB_ROWS, LANE), lambda i: (0, 0)),     # resident param slab
        ],
        out_specs=pl.BlockSpec((tb, HIDDEN), lambda i: (i, 0)),    # true-width 32-lane output
        compiler_params=pltpu.CompilerParams(
            dimension_semantics=("parallel",)),
    )(x, slab)

    # rows [B, bp) are padding garbage (relu(b1)@W2+b2); drop them only if padding happened
    return out if bp == B else out[:B]


# ------------------------- deterministic parameters --------------------------
def make_params(key):
    def linear(key, fan_in, fan_out):
        k1, k2 = jax.random.split(key)
        scale = 1.0 / jnp.sqrt(jnp.float32(fan_in))
        w = jax.random.uniform(k1, (fan_in, fan_out), jnp.float32, -scale, scale)
        b = jax.random.uniform(k2, (fan_out,), jnp.float32, -scale, scale)
        return w, b

    k1, k2, k3 = jax.random.split(key, 3)
    p = {}
    p["wg"], p["bg"] = linear(k1, GSIZE, HIDDEN)        # g_enc Linear
    p["wk"], p["bk"] = linear(k2, KSIZE + 1, HIDDEN)    # k_enc Linear
    p["wh"], p["bh"] = linear(k3, 2 * HIDDEN, HIDDEN)   # hidden Linear
    return p


# ----------------------------- pure-JAX reference ----------------------------
def reference_forward(g, k, t, p):
    hi = jax.lax.Precision.HIGHEST
    genc = jnp.maximum(jnp.dot(g, p["wg"], precision=hi) + p["bg"], 0.0)
    kt = jnp.concatenate([k, t], axis=-1)
    kenc = jnp.maximum(jnp.dot(kt, p["wk"], precision=hi) + p["bk"], 0.0)
    h = jnp.concatenate([genc, kenc], axis=-1)
    return jnp.dot(h, p["wh"], precision=hi) + p["bh"]


# ----------------------------------- main ------------------------------------
if __name__ == "__main__":
    key = jax.random.PRNGKey(0)
    kp, kg, kk, kt = jax.random.split(key, 4)

    B = 256  # batch of objects (rows); tile logic caps tb at 128 -> grid = (2,)
    params = make_params(kp)
    slab = pack_params(params)

    g = jax.random.normal(kg, (B, GSIZE), jnp.float32)
    k = jax.random.normal(kk, (B, KSIZE), jnp.float32)
    t = jax.random.normal(kt, (B, 1), jnp.float32)

    out = phys_obj_encoder_forward(g, k, t, slab)
    out = jax.block_until_ready(out)

    ref = reference_forward(g, k, t, params)
    assert out.shape == (B, HIDDEN)
    # tolerance covers MXU-vs-XLA matmul precision differences at these tiny shapes
    assert jnp.allclose(out, ref, rtol=2e-2, atol=2e-2), "mismatch vs reference"

    print("KERNEL_OK")
</pallas_src>

<mosaic_0001>
module attributes {stable_mosaic.version = 11 : i64} {
  func.func @_encoder_kernel(%arg0: i32, %arg1: memref<128x16xf32, #tpu.memory_space<vmem>>, %arg2: memref<88x128xf32, #tpu.memory_space<vmem>>, %arg3: memref<128x32xf32, #tpu.memory_space<vmem>>) attributes {dimension_semantics = [#tpu.dimension_semantics<parallel>], iteration_bounds = array<i64: 2>, scalar_prefetch = 0 : i64, scratch_operands = 0 : i64, tpu.core_type = #tpu.core_type<tc>, window_params = [{transform_indices = @transform_0, window_bounds = array<i64: 128, 16>}, {pipeline_mode = #tpu.pipeline_mode<synchronous>, transform_indices = @transform_1, window_bounds = array<i64: 88, 128>}, {transform_indices = @transform_2, window_bounds = array<i64: 128, 32>}]} {
    %c0 = arith.constant 0 : index
    %c0_0 = arith.constant 0 : index
    %0 = vector.load %arg1[%c0, %c0_0] : memref<128x16xf32, #tpu.memory_space<vmem>>, vector<128x16xf32>
    %c0_1 = arith.constant 0 : index
    %c0_2 = arith.constant 0 : index
    %1 = vector.load %arg2[%c0_1, %c0_2] : memref<88x128xf32, #tpu.memory_space<vmem>>, vector<16x64xf32>
    %c80 = arith.constant 80 : index
    %c0_3 = arith.constant 0 : index
    %2 = vector.load %arg2[%c80, %c0_3] : memref<88x128xf32, #tpu.memory_space<vmem>>, vector<1x64xf32>
    %c16 = arith.constant 16 : index
    %c0_4 = arith.constant 0 : index
    %3 = vector.load %arg2[%c16, %c0_4] : memref<88x128xf32, #tpu.memory_space<vmem>>, vector<64x32xf32>
    %c81 = arith.constant 81 : index
    %c0_5 = arith.constant 0 : index
    %4 = vector.load %arg2[%c81, %c0_5] : memref<88x128xf32, #tpu.memory_space<vmem>>, vector<1x32xf32>
    %cst = arith.constant dense<0.000000e+00> : vector<128x64xf32>
    %5 = tpu.matmul %0, %1, %cst {dimension_numbers = #tpu.dot_dimension_numbers<[1], [0], [0], [1], [0, 0, 1, 1], [], []>} : vector<128x16xf32>, vector<16x64xf32>, vector<128x64xf32> -> vector<128x64xf32>
    %6 = vector.broadcast %2 : vector<1x64xf32> to vector<128x64xf32>
    %7 = arith.addf %5, %6 : vector<128x64xf32>
    %cst_6 = arith.constant 0.000000e+00 : f32
    %8 = vector.broadcast %cst_6 : f32 to vector<128x64xf32>
    %9 = arith.maximumf %7, %8 : vector<128x64xf32>
    %cst_7 = arith.constant dense<0.000000e+00> : vector<128x32xf32>
    %10 = tpu.matmul %9, %3, %cst_7 {dimension_numbers = #tpu.dot_dimension_numbers<[1], [0], [0], [1], [0, 0, 1, 1], [], []>} : vector<128x64xf32>, vector<64x32xf32>, vector<128x32xf32> -> vector<128x32xf32>
    %11 = vector.broadcast %4 : vector<1x32xf32> to vector<128x32xf32>
    %12 = arith.addf %10, %11 : vector<128x32xf32>
    %c0_8 = arith.constant 0 : index
    %c0_9 = arith.constant 0 : index
    %13 = vector.load %arg3[%c0_8, %c0_9] : memref<128x32xf32, #tpu.memory_space<vmem>>, vector<128x32xf32>
    tpu.vector_store %arg3[%c0_8, %c0_9], %12 {strides = array<i32>} : memref<128x32xf32, #tpu.memory_space<vmem>>, vector<128x32xf32>,
    return
  }
  func.func @transform_0(%arg0: i32) -> (i32, i32) {
    %c0_i32 = arith.constant 0 : i32
    %c0_i32_0 = arith.constant 0 : i32
    return %arg0, %c0_i32 : i32, i32
  }
  func.func @transform_1(%arg0: i32) -> (i32, i32) {
    %c0_i32 = arith.constant 0 : i32
    %c0_i32_0 = arith.constant 0 : i32
    %c0_i32_1 = arith.constant 0 : i32
    return %c0_i32, %c0_i32_0 : i32, i32
  }
  func.func @transform_2(%arg0: i32) -> (i32, i32) {
    %c0_i32 = arith.constant 0 : i32
    %c0_i32_0 = arith.constant 0 : i32
    return %arg0, %c0_i32 : i32, i32
  }
}

</mosaic_0001>

<bundles_post_ra>
// kernel: tpu_custom_call.1
= control target key start
LH: loop header
LB: loop body
LE: loop exit
PB: predicated region body
PF: predicated region fallthrough
CT: control target
= control target key end

     0   :  { %s874_s9 = smov 0   ;;  %s1018_s0 = inlined_call_operand.vmem [shape: f32[256,16], index: 0, kind: input, shape index: {}]   ;;  %s1019_s1 = inlined_call_operand.vmem [shape: f32[88,128], index: 1, kind: input, shape index: {}]   ;;  %s1020_s2 = inlined_call_operand.vmem [shape: f32[256,32], index: 2, kind: output, shape index: {}]  }
   0x1 LB: > { %s660_s10 = sadd.s32 4294967295, %s857_s9   ;;  %p664_p0 = scmp.ge.s32.totalorder %s857_s9, 1  ;;  %s857_s9 = sphi %s874_s9, %s12_s9  }
   0x2   : > { %p113_p1 = scmp.lt.s32.totalorder %s857_s9, 3 }
   0x4   : > { %p114_p2 = pnand %p664_p0, %p113_p1 }
   0x5   : > { %v163_v0 = vld [vmem:[%s1019_s1] sm:$0xff] (!%p114_p2)  ;;  %v164_v1 = vld [vmem:[%s1019_s1 + $0x8] sm:$0xff] (!%p114_p2)  ;;  %s665_s15 = sshll.u32 (!%p114_p2), %s660_s10, 4  ;;  %v166_v2 = vld [vmem:[%s1019_s1 + $0x10] sm:$0xff] (!%p114_p2)  ;;  %vm179_vm0 = vcmask (!%p114_p2), 130048   ;;  %vm393_vm1 = vcmask (!%p114_p2), 523264  }
   0x6   : > { %117 = sbr.rel (%p114_p2) target bundleno = 480 (0x1e0), region = 28  ;;  %v815_v3 = vpack.c.bf16 (!%p114_p2), %v164_v1, %v163_v0  ;;  %p136_p3 = scmp.lt.s32.totalorder (!%p114_p2), %s665_s15, 31  ;;  %v167_v4 = vld [vmem:[%s1019_s1 + $0x18] sm:$0xff] (!%p114_p2)  ;;  %v168_v5 = vld [vmem:[%s1019_s1 + $0x20] sm:$0xff] (!%p114_p2)  ;;  %v169_v6 = vld [vmem:[%s1019_s1 + $0x28] sm:$0xff] (!%p114_p2)  ;;  %vm587_vm2 = vcmask (!%p114_p2), 261120  }
   0x7   : > { %v819_v7 = vpack.c.bf16 (!%p114_p2), %v167_v4, %v166_v2  ;;  %v823_v8 = vpack.c.bf16 (!%p114_p2), %v169_v6, %v168_v5  ;;  %v170_v9 = vld [vmem:[%s1019_s1 + $0x30] sm:$0xff] (!%p114_p2)  ;;  %v171_v10 = vld [vmem:[%s1019_s1 + $0x38] sm:$0xff] (!%p114_p2)  ;;  %v172_v28 = vld [vmem:[%s1019_s1 + $0x40] sm:$0xff] (!%p114_p2) }
   0x8   : > { %816 = vmatprep.subr.bf16.mxu0 (!%p114_p2), %v815_v3  ;;  %v827_v14 = vpack.c.bf16 (!%p114_p2), %v171_v10, %v170_v9  ;;  %v173_v29 = vld [vmem:[%s1019_s1 + $0x48] sm:$0xff] (!%p114_p2)  ;;  %v669_v31 = vld [vmem:[%s1019_s1 + $0x50] ss:$0 sm:$0xff] (!%p114_p2) }
   0x9   : > { %818 = vmatpush3.bf16.msra.mxu0 (!%p114_p2), %v815_v3  ;;  %835 = vmatprep.subr.bf16.mxu1 (!%p114_p2), %v819_v7  ;;  %v831_v30 = vpack.c.bf16 (!%p114_p2), %v173_v29, %v172_v28 }
   0xa   : > { %820 = vmatprep.subr.bf16.mxu0 (!%p114_p2), %v819_v7  ;;  %839 = vmatpush3.bf16.msra.mxu1 (!%p114_p2), %v819_v7 }
   0xb   : > { %836 = vmatprep.subr.bf16.mxu1 (!%p114_p2), %v823_v8 }
   0xd   : > { %s1022_s15 = smov (!%p136_p3, %s665_s15), 31 }
   0xe   : > { %s666_s24 = sshll.u32 %s1022_s15, 3  ;;  %840 = vmatpush3.bf16.msra.mxu1 %v823_v8 }
   0xf   : > { %s908_s27 = scalar_lea.vmem %s1018_s0, %s666_s24  ;;  %837 = vmatprep.subr.bf16.mxu1 %v827_v14  ;;  %s981_s16 = scalar_lea.vmem %s1020_s2, %s666_s24 }
  0x10   : > { %v147_v11 = vld [vmem:[%s908_s27] sm:$0xff]  ;;  %v148_v12 = vld [vmem:[%s908_s27 + $0x8] sm:$0xff]  ;;  %v149_v13 = vld [vmem:[%s908_s27 + $0x10] sm:$0xff] }
  0x11   : > { %751 = vmatprep.mubr.msk.f32.mxu0 %vm179_vm0, %v147_v11  ;;  %v150_v15 = vld [vmem:[%s908_s27 + $0x18] sm:$0xff]  ;;  %v151_v16 = vld [vmem:[%s908_s27 + $0x20] sm:$0xff]  ;;  %v152_v17 = vld [vmem:[%s908_s27 + $0x28] sm:$0xff] }
  0x12   : > { %752 = vmatmul.mubr.msk.f32.vlgmr.msra.gmra.mrb[0].mxu0 %vm179_vm0, %v148_v12  ;;  %841 = vmatpush3.bf16.msra.mxu1 %v827_v14  ;;  %v153_v18 = vld [vmem:[%s908_s27 + $0x30] sm:$0xff]  ;;  %v154_v19 = vld [vmem:[%s908_s27 + $0x38] sm:$0xff]  ;;  %v155_v20 = vld [vmem:[%s908_s27 + $0x40] sm:$0xff] }
  0x13   : > { %754 = vmatprep.mubr.msk.f32.mxu0 %vm179_vm0, %v149_v13  ;;  %822 = vmatpush3.bf16.msra.mxu0 %v819_v7  ;;  %v156_v21 = vld [vmem:[%s908_s27 + $0x48] sm:$0xff]  ;;  %v157_v22 = vld [vmem:[%s908_s27 + $0x50] sm:$0xff]  ;;  %v158_v23 = vld [vmem:[%s908_s27 + $0x58] sm:$0xff] }
  0x14   : > { %824 = vmatprep.subr.bf16.mxu0 %v823_v8  ;;  %v159_v24 = vld [vmem:[%s908_s27 + $0x60] sm:$0xff]  ;;  %v160_v25 = vld [vmem:[%s908_s27 + $0x68] sm:$0xff]  ;;  %v161_v26 = vld [vmem:[%s908_s27 + $0x70] sm:$0xff]  ;;  %838 = vmatprep.subr.bf16.mxu1 %v831_v30 }
  0x15   : > { %v162_v27 = vld [vmem:[%s908_s27 + $0x78] sm:$0xff] }
  0x16   : > { %755 = vmatmul.mubr.msk.f32.gmra.mrb[2].mxu0 %vm179_vm0, %v150_v15  ;;  %842 = vmatpush3.bf16.msra.mxu1 %v831_v30 }
  0x17   : > { %757 = vmatprep.mubr.msk.f32.mxu0 %vm179_vm0, %v151_v16  ;;  %826 = vmatpush3.bf16.msra.mxu0 %v823_v8  ;;  %v686_v16 = vld [vmem:[%s1019_s1 + $0x51] ss:$0 sm:$0xff] }
  0x18   : > { %828 = vmatprep.subr.bf16.mxu0 %v827_v14 }
  0x1a   : > { %758 = vmatmul.mubr.msk.f32.gmra.mrb[4].mxu0 %vm179_vm0, %v152_v17 }
  0x1b   : > { %760 = vmatprep.mubr.msk.f32.mxu0 %vm179_vm0, %v153_v18  ;;  %830 = vmatpush3.bf16.msra.mxu0 %v827_v14 }
  0x1c   : > { %832 = vmatprep.subr.bf16.mxu0 %v831_v30 }
  0x1e   : > { %761 = vmatmul.mubr.msk.f32.gmra.mrb[6].mxu0 %vm179_vm0, %v154_v19 }
  0x1f   : > { %763 = vmatprep.mubr.msk.f32.mxu0 %vm179_vm0, %v155_v20  ;;  %834 = vmatpush3.bf16.msra.mxu0 %v831_v30 }
  0x22   : > { %764 = vmatmul.mubr.msk.f32.gmra.mrb[8].mxu0 %vm179_vm0, %v156_v21 }
  0x23   : > { %766 = vmatprep.mubr.msk.f32.mxu0 %vm179_vm0, %v157_v22 }
  0x26   : > { %767 = vmatmul.mubr.msk.f32.gmra.mrb[10].mxu0 %vm179_vm0, %v158_v23 }
  0x27   : > { %769 = vmatprep.mubr.msk.f32.mxu0 %vm179_vm0, %v159_v24 }
  0x2a   : > { %770 = vmatmul.mubr.msk.f32.gmra.mrb[12].mxu0 %vm179_vm0, %v160_v25 }
  0x2b   : > { %772 = vmatprep.mubr.msk.f32.mxu0 %vm179_vm0, %v161_v26 }
  0x2e   : > { %773 = vmatmul.mubr.msk.f32.gmra.mrb[14].mxu0 %vm179_vm0, %v162_v27 }
  0xe5   : > { %v753_v32 = vpop.f32.mrb[0].mxu0 }
  0xe6   : > { %v300_v33 = vadd.f32 %v753_v32, %v669_v31  ;;  %v294_v34 = vpop.f32.mrb[1].mxu0 }
  0xe7   : > { %v295_v35 = vadd.f32 %v669_v31, %v294_v34 }
  0xe8   : > { %v374_v38 = vmax.f32 %v300_v33, 0.0 }
  0xe9   : > { %v373_v36 = vmax.f32 %v295_v35, 0.0  ;;  %v756_v37 = vpop.f32.mrb[2].mxu0 }
  0xea   : > { %v310_v39 = vadd.f32 %v756_v37, %v669_v31  ;;  %v304_v40 = vpop.f32.mrb[3].mxu0 }
  0xeb   : > { %v305_v41 = vadd.f32 %v669_v31, %v304_v40  ;;  %791 = vmatprep.mubr.msk.f32.mxu0 %vm393_vm1, %v373_v36 }
  0xec   : > { %792 = vmatmul.mubr.msk.f32.vlgmr.msra.gmra.mrb[16].mxu0 %vm393_vm1, %v374_v38  ;;  %v376_v44 = vmax.f32 %v310_v39, 0.0 }
  0xed   : > { %v375_v42 = vmax.f32 %v305_v41, 0.0  ;;  %v759_v43 = vpop.f32.mrb[4].mxu0 }
  0xee   : > { %v320_v45 = vadd.f32 %v759_v43, %v669_v31  ;;  %v314_v46 = vpop.f32.mrb[5].mxu0 }
  0xef   : > { %v315_v47 = vadd.f32 %v669_v31, %v314_v46  ;;  %794 = vmatprep.mubr.msk.f32.mxu1 %vm393_vm1, %v375_v42 }
  0xf0   : > { %795 = vmatmul.mubr.msk.f32.vlgmr.msra.gmra.mrb[0].mxu1 %vm393_vm1, %v376_v44  ;;  %v378_v50 = vmax.f32 %v320_v45, 0.0 }
  0xf1   : > { %v377_v48 = vmax.f32 %v315_v47, 0.0  ;;  %v762_v49 = vpop.f32.mrb[6].mxu0 }
  0xf2   : > { %v330_v51 = vadd.f32 %v762_v49, %v669_v31  ;;  %v324_v52 = vpop.f32.mrb[7].mxu0 }
  0xf3   : > { %v325_v53 = vadd.f32 %v669_v31, %v324_v52  ;;  %797 = vmatprep.mubr.msk.f32.mxu1 %vm393_vm1, %v377_v48 }
  0xf4   : > { %798 = vmatmul.mubr.msk.f32.gmra.mrb[2].mxu1 %vm393_vm1, %v378_v50  ;;  %v380_v56 = vmax.f32 %v330_v51, 0.0 }
  0xf5   : > { %v379_v54 = vmax.f32 %v325_v53, 0.0  ;;  %v765_v55 = vpop.f32.mrb[8].mxu0 }
  0xf6   : > { %v340_v57 = vadd.f32 %v765_v55, %v669_v31  ;;  %v334_v58 = vpop.f32.mrb[9].mxu0 }
  0xf7   : > { %v335_v59 = vadd.f32 %v669_v31, %v334_v58  ;;  %800 = vmatprep.mubr.msk.f32.mxu1 %vm393_vm1, %v379_v54 }
  0xf8   : > { %801 = vmatmul.mubr.msk.f32.gmra.mrb[4].mxu1 %vm393_vm1, %v380_v56  ;;  %v382_v62 = vmax.f32 %v340_v57, 0.0 }
  0xf9   : > { %v381_v60 = vmax.f32 %v335_v59, 0.0  ;;  %v768_v61 = vpop.f32.mrb[10].mxu0 }
  0xfa   : > { %v350_v63 = vadd.f32 %v768_v61, %v669_v31  ;;  %v344_v0 = vpop.f32.mrb[11].mxu0 }
  0xfb   : > { %v345_v1 = vadd.f32 %v669_v31, %v344_v0  ;;  %803 = vmatprep.mubr.msk.f32.mxu1 %vm393_vm1, %v381_v60 }
  0xfc   : > { %804 = vmatmul.mubr.msk.f32.gmra.mrb[6].mxu1 %vm393_vm1, %v382_v62  ;;  %v384_v4 = vmax.f32 %v350_v63, 0.0 }
  0xfd   : > { %v383_v2 = vmax.f32 %v345_v1, 0.0  ;;  %v771_v3 = vpop.f32.mrb[12].mxu0 }
  0xfe   : > { %v360_v5 = vadd.f32 %v771_v3, %v669_v31  ;;  %v354_v6 = vpop.f32.mrb[13].mxu0 }
  0xff   : > { %v355_v7 = vadd.f32 %v669_v31, %v354_v6  ;;  %806 = vmatprep.mubr.msk.f32.mxu1 %vm393_vm1, %v383_v2 }
 0x100   : > { %807 = vmatmul.mubr.msk.f32.gmra.mrb[8].mxu1 %vm393_vm1, %v384_v4  ;;  %v386_v10 = vmax.f32 %v360_v5, 0.0 }
 0x101   : > { %v385_v8 = vmax.f32 %v355_v7, 0.0  ;;  %v774_v9 = vpop.f32.mrb[14].mxu0 }
 0x102   : > { %v370_v11 = vadd.f32 %v774_v9, %v669_v31  ;;  %v364_v12 = vpop.f32.mrb[15].mxu0 }
 0x103   : > { %v365_v13 = vadd.f32 %v669_v31, %v364_v12  ;;  %809 = vmatprep.mubr.msk.f32.mxu1 %vm393_vm1, %v385_v8 }
 0x104   : > { %810 = vmatmul.mubr.msk.f32.gmra.mrb[10].mxu1 %vm393_vm1, %v386_v10  ;;  %v388_v15 = vmax.f32 %v370_v11, 0.0 }
 0x105   : > { %v387_v14 = vmax.f32 %v365_v13, 0.0 }
 0x107   : > { %812 = vmatprep.mubr.msk.f32.mxu1 %vm393_vm1, %v387_v14 }
 0x108   : > { %813 = vmatmul.mubr.msk.f32.gmra.mrb[12].mxu1 %vm393_vm1, %v388_v15 }
 0x1bf   : > { %v793_v17 = vpop.f32.mrb[16].mxu0 }
 0x1c0   : > { %v514_v18 = vadd.f32 %v793_v17, %v686_v16  ;;  %v508_v19 = vpop.f32.mrb[17].mxu0 }
 0x1c1   : > { %v509_v20 = vadd.f32 %v686_v16, %v508_v19 }
 0x1c2   : > { %589 = vst.msk [vmem:[%s981_s16 + $0x8] sm:$0xff] %vm587_vm2, %v514_v18 }
 0x1c3   : > { %588 = vst.msk [vmem:[%s981_s16] sm:$0xff] %vm587_vm2, %v509_v20  ;;  %v796_v21 = vpop.f32.mrb[0].mxu1 }
 0x1c4   : > { %v524_v22 = vadd.f32 %v796_v21, %v686_v16  ;;  %v518_v23 = vpop.f32.mrb[1].mxu1 }
 0x1c5   : > { %v519_v24 = vadd.f32 %v686_v16, %v518_v23 }
 0x1c6   : > { %591 = vst.msk [vmem:[%s981_s16 + $0x18] sm:$0xff] %vm587_vm2, %v524_v22 }
 0x1c7   : > { %590 = vst.msk [vmem:[%s981_s16 + $0x10] sm:$0xff] %vm587_vm2, %v519_v24  ;;  %v799_v25 = vpop.f32.mrb[2].mxu1 }
 0x1c8   : > { %v534_v26 = vadd.f32 %v799_v25, %v686_v16  ;;  %v528_v27 = vpop.f32.mrb[3].mxu1 }
 0x1c9   : > { %v529_v28 = vadd.f32 %v686_v16, %v528_v27 }
 0x1ca   : > { %593 = vst.msk [vmem:[%s981_s16 + $0x28] sm:$0xff] %vm587_vm2, %v534_v26 }
 0x1cb   : > { %592 = vst.msk [vmem:[%s981_s16 + $0x20] sm:$0xff] %vm587_vm2, %v529_v28  ;;  %v802_v29 = vpop.f32.mrb[4].mxu1 }
 0x1cc   : > { %v544_v30 = vadd.f32 %v802_v29, %v686_v16  ;;  %v538_v31 = vpop.f32.mrb[5].mxu1 }
 0x1cd   : > { %v539_v32 = vadd.f32 %v686_v16, %v538_v31 }
 0x1ce   : > { %595 = vst.msk [vmem:[%s981_s16 + $0x38] sm:$0xff] %vm587_vm2, %v544_v30 }
 0x1cf   : > { %594 = vst.msk [vmem:[%s981_s16 + $0x30] sm:$0xff] %vm587_vm2, %v539_v32  ;;  %v805_v33 = vpop.f32.mrb[6].mxu1 }
 0x1d0   : > { %v554_v34 = vadd.f32 %v805_v33, %v686_v16  ;;  %v548_v35 = vpop.f32.mrb[7].mxu1 }
 0x1d1   : > { %v549_v36 = vadd.f32 %v686_v16, %v548_v35 }
 0x1d2   : > { %597 = vst.msk [vmem:[%s981_s16 + $0x48] sm:$0xff] %vm587_vm2, %v554_v34 }
 0x1d3   : > { %596 = vst.msk [vmem:[%s981_s16 + $0x40] sm:$0xff] %vm587_vm2, %v549_v36  ;;  %v808_v37 = vpop.f32.mrb[8].mxu1 }
 0x1d4   : > { %v564_v38 = vadd.f32 %v808_v37, %v686_v16  ;;  %v558_v39 = vpop.f32.mrb[9].mxu1 }
 0x1d5   : > { %v559_v40 = vadd.f32 %v686_v16, %v558_v39 }
 0x1d6   : > { %599 = vst.msk [vmem:[%s981_s16 + $0x58] sm:$0xff] %vm587_vm2, %v564_v38 }
 0x1d7   : > { %598 = vst.msk [vmem:[%s981_s16 + $0x50] sm:$0xff] %vm587_vm2, %v559_v40  ;;  %v811_v41 = vpop.f32.mrb[10].mxu1 }
 0x1d8   : > { %v574_v42 = vadd.f32 %v811_v41, %v686_v16  ;;  %v568_v43 = vpop.f32.mrb[11].mxu1 }
 0x1d9   : > { %v569_v44 = vadd.f32 %v686_v16, %v568_v43 }
 0x1da   : > { %601 = vst.msk [vmem:[%s981_s16 + $0x68] sm:$0xff] %vm587_vm2, %v574_v42 }
 0x1db   : > { %600 = vst.msk [vmem:[%s981_s16 + $0x60] sm:$0xff] %vm587_vm2, %v569_v44  ;;  %v814_v45 = vpop.f32.mrb[12].mxu1 }
 0x1dc   : > { %v584_v46 = vadd.f32 %v814_v45, %v686_v16  ;;  %v578_v47 = vpop.f32.mrb[13].mxu1 }
 0x1dd   : > { %v579_v48 = vadd.f32 %v686_v16, %v578_v47 }
 0x1de   : > { %603 = vst.msk [vmem:[%s981_s16 + $0x78] sm:$0xff] %vm587_vm2, %v584_v46 }
 0x1df   : > { %602 = vst.msk [vmem:[%s981_s16 + $0x70] sm:$0xff] %vm587_vm2, %v579_v48 }
 0x1e0 PF: > { %s12_s9 = sadd.s32 1, %s857_s9  }
 0x1e1   : > { %p9_p4 = scmp.ge.s32.totalorder %s12_s9, 4  }
 0x1e3   :  { %11 = sbr.rel (!%p9_p4) target bundleno = 1 (0x1), region = 58 }

</bundles_post_ra>
